<compile_context>
chip_gen: v6e
topology: v6e:2x2x1
jax: 0.10.0
libtpu: 0.0.40
codegen_flags: <defaults>
</compile_context>

<pallas_src>
import jax
import jax.numpy as jnp
from jax.experimental import pallas as pl
from jax.experimental.pallas import tpu as pltpu


_NEG_SLOPE = 0.01  # PyTorch F.leaky_relu default negative_slope


def _decoder_kernel(z_ref, w1_ref, b1_ref, w2_ref, b2_ref, out_ref):
    # Layer 1: (TB, L) @ (L, H) + (1, H)
    h = jnp.dot(z_ref[...], w1_ref[...], preferred_element_type=jnp.float32)
    h = h + b1_ref[...]
    # LeakyReLU(0.01): maximum(h, 0.01*h) == where(h>=0, h, 0.01*h)
    h = jnp.maximum(h, _NEG_SLOPE * h)
    # Layer 2: (TB, H) @ (H, D) + (1, D)
    out = jnp.dot(h, w2_ref[...], preferred_element_type=jnp.float32)
    out_ref[...] = (out + b2_ref[...]).astype(out_ref.dtype)


def _round_up(x, m):
    return ((x + m - 1) // m) * m


def decoder_forward(z, w1, b1, w2, b2, *, block_b=512):
    """z: (B, latent_dims) -> (B, 1, 27)  (input_dims must equal 27)."""
    B, L = z.shape
    H = w1.shape[1]            # 16
    D = w2.shape[1]            # input_dims (= 27 so the reshape is exact)
    assert D == 27, "module reshapes to (-1, 1, 27), so input_dims must be 27"

    # Batch tile: multiple of 8 (f32 sublanes).  >=512 rows when the batch is
    # big enough to amortize per-step overhead; otherwise one tile covering
    # the 8-padded batch.
    tb = block_b if B >= block_b else _round_up(B, 8)
    b_pad = _round_up(B, tb)
    if b_pad != B:
        # Zero-padded rows are computed (bias only) and sliced off below.
        z = jnp.pad(z, ((0, b_pad - B), (0, 0)))

    grid = (b_pad // tb,)

    cost = pl.CostEstimate(
        flops=2 * b_pad * (L * H + H * D),
        transcendentals=0,
        bytes_accessed=4 * (b_pad * (L + D) + L * H + H + H * D + D),
    )

    out_flat = pl.pallas_call(
        _decoder_kernel,
        out_shape=jax.ShapeDtypeStruct((b_pad, D), jnp.float32),
        grid_spec=pltpu.PrefetchScalarGridSpec(
            num_scalar_prefetch=0,
            grid=grid,
            in_specs=[
                # z: tiled along the batch axis.
                pl.BlockSpec((tb, L), lambda i: (i, 0)),
                # Weights / biases: constant block index -> stay VMEM-resident
                # across all grid steps (no re-DMA per step).
                pl.BlockSpec((L, H), lambda i: (0, 0)),
                pl.BlockSpec((1, H), lambda i: (0, 0)),
                pl.BlockSpec((H, D), lambda i: (0, 0)),
                pl.BlockSpec((1, D), lambda i: (0, 0)),
            ],
            out_specs=pl.BlockSpec((tb, D), lambda i: (i, 0)),
        ),
        compiler_params=pltpu.CompilerParams(
            dimension_semantics=("parallel",)),
        cost_estimate=cost,
    )(z, w1, b1, w2, b2)

    out_flat = out_flat[:B]
    # Same semantics as z.reshape((-1, 1, 27)) in the PyTorch module.
    return out_flat.reshape((-1, 1, 27))


def init_params(key, latent_dims, input_dims, hidden=16):
    """Deterministic init mimicking nn.Linear default (uniform +-1/sqrt(fan_in))."""
    k1, k2, k3, k4 = jax.random.split(key, 4)
    bound1 = 1.0 / jnp.sqrt(latent_dims)
    bound2 = 1.0 / jnp.sqrt(hidden)
    w1 = jax.random.uniform(k1, (latent_dims, hidden), jnp.float32, -bound1, bound1)
    b1 = jax.random.uniform(k2, (1, hidden), jnp.float32, -bound1, bound1)
    w2 = jax.random.uniform(k3, (hidden, input_dims), jnp.float32, -bound2, bound2)
    b2 = jax.random.uniform(k4, (1, input_dims), jnp.float32, -bound2, bound2)
    return w1, b1, w2, b2


if __name__ == "__main__":
    # Small shapes consistent with the module: the final reshape (-1, 1, 27)
    # implies input_dims = 27; pick latent_dims = 8, batch = 2.
    batch, latent_dims, input_dims = 2, 8, 27

    key = jax.random.PRNGKey(0)
    kz, kp = jax.random.split(key)
    z = jax.random.normal(kz, (batch, latent_dims), jnp.float32)
    w1, b1, w2, b2 = init_params(kp, latent_dims, input_dims)

    out = decoder_forward(z, w1, b1, w2, b2)
    out = jax.block_until_ready(out)

    # Reference check in plain JAX (same math as the PyTorch forward).
    h_ref = z @ w1 + b1
    h_ref = jnp.where(h_ref >= 0.0, h_ref, 0.01 * h_ref)
    ref = (h_ref @ w2 + b2).reshape((-1, 1, 27))
    assert out.shape == (batch, 1, 27)
    assert jnp.allclose(out, ref, atol=1e-5, rtol=1e-5)

    # Also exercise a larger, non-tile-aligned batch to validate the tiled
    # (padded) path that real workloads will hit.
    big_b = 1030  # not a multiple of 512 -> exercises pad + slice
    zb = jax.random.normal(kz, (big_b, latent_dims), jnp.float32)
    out_b = jax.block_until_ready(decoder_forward(zb, w1, b1, w2, b2))
    hb = zb @ w1 + b1
    hb = jnp.where(hb >= 0.0, hb, 0.01 * hb)
    ref_b = (hb @ w2 + b2).reshape((-1, 1, 27))
    assert out_b.shape == (big_b, 1, 27)
    assert jnp.allclose(out_b, ref_b, atol=1e-5, rtol=1e-5)

    print("KERNEL_OK")
</pallas_src>

<mosaic_0001>
module attributes {stable_mosaic.version = 11 : i64} {
  func.func @_decoder_kernel(%arg0: i32, %arg1: memref<8x8xf32, #tpu.memory_space<vmem>>, %arg2: memref<8x16xf32, #tpu.memory_space<vmem>>, %arg3: memref<1x16xf32, #tpu.memory_space<vmem>>, %arg4: memref<16x27xf32, #tpu.memory_space<vmem>>, %arg5: memref<1x27xf32, #tpu.memory_space<vmem>>, %arg6: memref<8x27xf32, #tpu.memory_space<vmem>>) attributes {dimension_semantics = [#tpu.dimension_semantics<parallel>], iteration_bounds = array<i64: 1>, scalar_prefetch = 0 : i64, scratch_operands = 0 : i64, tpu.core_type = #tpu.core_type<tc>, window_params = [{transform_indices = @transform_0, window_bounds = array<i64: 8, 8>}, {pipeline_mode = #tpu.pipeline_mode<synchronous>, transform_indices = @transform_1, window_bounds = array<i64: 8, 16>}, {pipeline_mode = #tpu.pipeline_mode<synchronous>, transform_indices = @transform_2, window_bounds = array<i64: 1, 16>}, {pipeline_mode = #tpu.pipeline_mode<synchronous>, transform_indices = @transform_3, window_bounds = array<i64: 16, 27>}, {pipeline_mode = #tpu.pipeline_mode<synchronous>, transform_indices = @transform_4, window_bounds = array<i64: 1, 27>}, {transform_indices = @transform_5, window_bounds = array<i64: 8, 27>}]} {
    %c0 = arith.constant 0 : index
    %c0_0 = arith.constant 0 : index
    %0 = vector.load %arg1[%c0, %c0_0] : memref<8x8xf32, #tpu.memory_space<vmem>>, vector<8x8xf32>
    %c0_1 = arith.constant 0 : index
    %c0_2 = arith.constant 0 : index
    %1 = vector.load %arg2[%c0_1, %c0_2] : memref<8x16xf32, #tpu.memory_space<vmem>>, vector<8x16xf32>
    %cst = arith.constant dense<0.000000e+00> : vector<8x16xf32>
    %2 = tpu.matmul %0, %1, %cst {dimension_numbers = #tpu.dot_dimension_numbers<[1], [0], [0], [1], [0, 0, 1, 1], [], []>} : vector<8x8xf32>, vector<8x16xf32>, vector<8x16xf32> -> vector<8x16xf32>
    %c0_3 = arith.constant 0 : index
    %c0_4 = arith.constant 0 : index
    %3 = vector.load %arg3[%c0_3, %c0_4] : memref<1x16xf32, #tpu.memory_space<vmem>>, vector<1x16xf32>
    %4 = vector.broadcast %3 : vector<1x16xf32> to vector<8x16xf32>
    %5 = arith.addf %2, %4 : vector<8x16xf32>
    %cst_5 = arith.constant 0.00999999977 : f32
    %6 = vector.broadcast %cst_5 : f32 to vector<8x16xf32>
    %7 = arith.mulf %6, %5 : vector<8x16xf32>
    %8 = arith.maximumf %5, %7 : vector<8x16xf32>
    %c0_6 = arith.constant 0 : index
    %c0_7 = arith.constant 0 : index
    %9 = vector.load %arg4[%c0_6, %c0_7] : memref<16x27xf32, #tpu.memory_space<vmem>>, vector<16x27xf32>
    %cst_8 = arith.constant dense<0.000000e+00> : vector<8x27xf32>
    %10 = tpu.matmul %8, %9, %cst_8 {dimension_numbers = #tpu.dot_dimension_numbers<[1], [0], [0], [1], [0, 0, 1, 1], [], []>} : vector<8x16xf32>, vector<16x27xf32>, vector<8x27xf32> -> vector<8x27xf32>
    %c0_9 = arith.constant 0 : index
    %c0_10 = arith.constant 0 : index
    %11 = vector.load %arg5[%c0_9, %c0_10] : memref<1x27xf32, #tpu.memory_space<vmem>>, vector<1x27xf32>
    %12 = vector.broadcast %11 : vector<1x27xf32> to vector<8x27xf32>
    %13 = arith.addf %10, %12 : vector<8x27xf32>
    %c0_11 = arith.constant 0 : index
    %c0_12 = arith.constant 0 : index
    %14 = vector.load %arg6[%c0_11, %c0_12] : memref<8x27xf32, #tpu.memory_space<vmem>>, vector<8x27xf32>
    tpu.vector_store %arg6[%c0_11, %c0_12], %13 {strides = array<i32>} : memref<8x27xf32, #tpu.memory_space<vmem>>, vector<8x27xf32>,
    return
  }
  func.func @transform_0(%arg0: i32) -> (i32, i32) {
    %c0_i32 = arith.constant 0 : i32
    %c0_i32_0 = arith.constant 0 : i32
    return %arg0, %c0_i32 : i32, i32
  }
  func.func @transform_1(%arg0: i32) -> (i32, i32) {
    %c0_i32 = arith.constant 0 : i32
    %c0_i32_0 = arith.constant 0 : i32
    %c0_i32_1 = arith.constant 0 : i32
    return %c0_i32, %c0_i32_0 : i32, i32
  }
  func.func @transform_2(%arg0: i32) -> (i32, i32) {
    %c0_i32 = arith.constant 0 : i32
    %c0_i32_0 = arith.constant 0 : i32
    %c0_i32_1 = arith.constant 0 : i32
    return %c0_i32, %c0_i32_0 : i32, i32
  }
  func.func @transform_3(%arg0: i32) -> (i32, i32) {
    %c0_i32 = arith.constant 0 : i32
    %c0_i32_0 = arith.constant 0 : i32
    %c0_i32_1 = arith.constant 0 : i32
    return %c0_i32, %c0_i32_0 : i32, i32
  }
  func.func @transform_4(%arg0: i32) -> (i32, i32) {
    %c0_i32 = arith.constant 0 : i32
    %c0_i32_0 = arith.constant 0 : i32
    %c0_i32_1 = arith.constant 0 : i32
    return %c0_i32, %c0_i32_0 : i32, i32
  }
  func.func @transform_5(%arg0: i32) -> (i32, i32) {
    %c0_i32 = arith.constant 0 : i32
    %c0_i32_0 = arith.constant 0 : i32
    return %arg0, %c0_i32 : i32, i32
  }
}

</mosaic_0001>

<bundles_post_ra>
// kernel: tpu_custom_call.1
= control target key start
LH: loop header
LB: loop body
LE: loop exit
PB: predicated region body
PF: predicated region fallthrough
CT: control target
= control target key end

     0   :  { %10 = vsyncpa [#allocation3], 0  ;;  %s415_s0 = inlined_call_operand.hbm [shape: f32[8,8], index: 0, kind: input, shape index: {}]   ;;  %s416_s1 = inlined_call_operand.hbm [shape: f32[8,16], index: 1, kind: input, shape index: {}]   ;;  %s417_s2 = inlined_call_operand.vmem [shape: f32[1,16], index: 2, kind: input, shape index: {}]   ;;  %s418_s3 = inlined_call_operand.hbm [shape: f32[16,27], index: 3, kind: input, shape index: {}]   ;;  %s419_s4 = inlined_call_operand.vmem [shape: f32[1,27], index: 4, kind: input, shape index: {}]   ;;  %s420_s5 = inlined_call_operand.hbm [shape: f32[8,27], index: 5, kind: output, shape index: {}]  }
   0x1   :  { %11 = vsyncpa [#allocation6], 0 }
   0x2   :  { %12 = vsyncpa [#allocation4], 0  ;;  %s359_s18 = smov [#allocation5]   ;;  %s360_s20 = smov [#allocation2]  }
   0x3   :  { %s29_s19 = sshll.u32 %s359_s18, 4  ;;  %s19_s21 = sshll.u32 %s360_s20, 4  ;;  %s30_s19 = int_to_ptr.vmem [resolvable:$true] %s29_s19  ;;  %s20_s21 = int_to_ptr.vmem [resolvable:$true] %s19_s21 }
   0x4   :  { %s281_s22 = scalar_lea.vmem %s30_s19, 128  ;;  %p286_p1 = scmp.lt.s32.totalorder %s30_s19, %s30_s19 }
   0x5   :  { %p282_p0 = scmp.ne.s32.totalorder %s30_s19, %s281_s22  ;;  %p287_p2 = scmp.lt.s32.totalorder %s281_s22, %s281_s22 }
   0x7   :  { %p288_p3 = por %p287_p2, %p286_p1 }
   0x9   :  { %p289_p4 = pnand %p288_p3, %p282_p0 }
   0xb   :  { %292 = shalt.err (!%p289_p4)
}
   0xc   :  { %32 = dma.hbm_to_vmem [thread:$0]  %s416_s1, 128, %s30_s19, [#allocation6]  }
   0xd   :  { %s301_s25 = scalar_lea.vmem %s20_s21, 128  ;;  %p306_p6 = scmp.lt.s32.totalorder %s20_s21, %s20_s21 }
   0xe   :  { %p302_p5 = scmp.ne.s32.totalorder %s20_s21, %s301_s25  ;;  %p307_p7 = scmp.lt.s32.totalorder %s301_s25, %s301_s25 }
  0x10   :  { %p308_p8 = por %p307_p7, %p306_p6 }
  0x12   :  { %p309_p9 = pnand %p308_p8, %p302_p5 }
  0x14   :  { %312 = shalt.err (!%p309_p9)
}
  0x15   :  { %22 = dma.hbm_to_vmem [thread:$0]  %s415_s0, 128, %s20_s21, [#allocation3]  }
  0x16   :  { %s361_s28 = smov [#allocation7]  }
  0x17   :  { %s40_s29 = sshll.u32 %s361_s28, 4  ;;  %s41_s29 = int_to_ptr.vmem [resolvable:$true] %s40_s29 }
  0x18   :  { %s321_s30 = scalar_lea.vmem %s41_s29, 256  ;;  %p326_p11 = scmp.lt.s32.totalorder %s41_s29, %s41_s29 }
  0x19   :  { %p322_p10 = scmp.ne.s32.totalorder %s41_s29, %s321_s30  ;;  %p327_p12 = scmp.lt.s32.totalorder %s321_s30, %s321_s30 }
  0x1b   :  { %p328_p13 = por %p327_p12, %p326_p11 }
  0x1d   :  { %p329_p0 = pnand %p328_p13, %p322_p10 }
  0x1f   :  { %332 = shalt.err (!%p329_p0)
}
  0x20   :  { %s362_s1 = smov 128   ;;  %s363_s6 = smov 8  }
  0x21   :  { %46 = dma.hbm_to_vmem [thread:$0]  %s418_s3, 256, %s41_s29, [#allocation6], %s362_s1, %s362_s1, %s363_s6  }
  0x22   :  { %353 = dma.done.wait [#allocation3], 128  }
  0x23   :  { %354 = vsyncadd [#allocation3], 4294967168 }
  0x24   :  { %355 = dma.done.wait [#allocation6], 384  }
  0x25   :  { %356 = vsyncadd [#allocation6], 4294966912  ;;  %v364_v0 = vmov 0.0   ;;  %vm365_vm0 = vmmov 0   ;;  %vm67_vm1 = vcmask 64512   ;;  %v59_v1 = vld [vmem:[#allocation5] sm:$0xff] }
  0x26   :  { %253 = vmatprep.subr.mxu0 %v364_v0  ;;  %255 = vmatprep.mubr.msk.f32.mxu0 %vm365_vm0, %v364_v0  ;;  %v58_v2 = vld [vmem:[#allocation2] sm:$0xff]  ;;  %v144_v3 = vld [vmem:[#allocation7 + $0x8] sm:$0xff]  ;;  %v143_v4 = vld [vmem:[#allocation7] sm:$0xff]  ;;  %vm152_vm2 = vcmask 130048   ;;  %s366_s11 = smov [#allocation8]   ;;  %vm226_vm3 = vcmask 220160  }
  0x27   :  { %258 = vmatprep.subr.mxu1 %v364_v0  ;;  %262 = vmatprep.mubr.msk.f32.mxu1 %vm365_vm0, %v364_v0  ;;  %v244_v5 = vld [vmem:[%s417_s2] ss:$0 sm:$0xff]  ;;  %s234_s12 = sshll.u32 %s366_s11, 4  ;;  %s235_s12 = int_to_ptr.vmem [resolvable:$true] %s234_s12 }
  0x28   :  { %254 = vmatpush3.msra.mxu0 %v59_v1  ;;  %259 = vmatpush3.msra.mxu1 %v144_v3  ;;  %v246_v11 = vld [vmem:[%s419_s4] ss:$0 sm:$0xff]  ;;  %s333_s2 = scalar_lea.vmem %s235_s12, 128  ;;  %p338_p2 = scmp.lt.s32.totalorder %s235_s12, %s235_s12 }
  0x29   :  { %256 = vmatmul.mubr.msk.f32.vlgmr.msra.gmra.mxu0 %vm67_vm1, %v58_v2  ;;  %260 = vmatprep.subr.mxu1 %v364_v0  ;;  %p334_p1 = scmp.ne.s32.totalorder %s235_s12, %s333_s2  ;;  %p339_p3 = scmp.lt.s32.totalorder %s333_s2, %s333_s2 }
  0x2a   :  { %261 = vmatpush3.msra.mxu1 %v143_v4 }
  0x2b   :  { %p340_p4 = por %p339_p3, %p338_p2 }
  0x2d   :  { %p341_p5 = pnand %p340_p4, %p334_p1 }
  0xe9   :  { %v137_v6 = vpop.f32.mrf.mxu0 }
  0xea   :  { %v138_v7 = vadd.f32 %v244_v5, %v137_v6 }
  0xeb   :  { %v257_v8 = vpop.f32.mrf.mxu0 }
  0xec   :  { %v141_v9 = vmul.f32 0.01, %v138_v7 }
  0xee   :  { %v142_v10 = vmax.f32 %v138_v7, %v141_v9 }
  0xf0   :  { %263 = vmatmul.mubr.msk.f32.vlgmr.msra.gmra.mxu1 %vm152_vm2, %v142_v10 }
 0x1b0   :  { %v222_v12 = vpop.f32.mrf.mxu1 }
 0x1b1   :  { %v223_v13 = vadd.f32 %v246_v11, %v222_v12 }
 0x1b2   :  { %v264_v14 = vpop.f32.mrf.mxu1 }
 0x1b3   :  { %227 = vst.msk [vmem:[#allocation8] sm:$0xff] %vm226_vm3, %v223_v13 }
 0x1b4   :  { %344 = shalt.err (!%p341_p5)
}
 0x1b5   :  { %237 = dma.vmem_to_hbm [thread:$0]  %s235_s12, 128, %s420_s5, [#allocation4]  }
 0x1b6   :  { %357 = dma.done.wait [#allocation4], 128  }
 0x1b7   :  { %358 = vsyncadd [#allocation4], 4294967168 }
 0x1b8   :  { %241 = vsyncpa [#allocation3], 1 }
 0x1b9   :  { %242 = vsyncpa [#allocation6], 1 }
 0x1ba   :  { %243 = vsyncpa [#allocation4], 1 }

</bundles_post_ra>
